<compile_context>
chip_gen: v7x
topology: tpu7x:2x2x1
jax: 0.10.0
libtpu: 0.0.40
codegen_flags: <defaults>
</compile_context>

<pallas_src>
import jax
import jax.numpy as jnp
from jax.experimental import pallas as pl
from jax.experimental.pallas import tpu as pltpu


def _attn_kernel(x_ref, e_ref, w_ref, p_ref, packed_ref):
    # x_ref      : (B, S, Ci)   input
    # e_ref      : (S, De)      embedding parameter (shared across batch)
    # w_ref      : (D, 2P)      fused [WqT | WkT] (transposed Linear weights)
    # p_ref      : (4, D)       rows: g1, b1, g2 (zero-padded to D), b2 (zero-padded)
    # packed_ref : (B, OUT_W)   lanes [0,S): attention weights; lane S: LN2(attended)[-1]
    x = x_ref[...].astype(jnp.float32)                 # (B, S, Ci)
    e = e_ref[...].astype(jnp.float32)                 # (S, De)
    B, S, Ci = x.shape
    De = e.shape[-1]
    D = Ci + De
    P = w_ref.shape[-1] // 2

    g1 = p_ref[0:1, :]                                 # (1, D)
    b1 = p_ref[1:2, :]                                 # (1, D)
    g2_last = p_ref[2:3, Ci - 1:Ci]                    # (1, 1)
    b2_last = p_ref[3:4, Ci - 1:Ci]                    # (1, 1)

    # --- LayerNorm1 statistics, one-pass variance; the E-half sums are batch-independent.
    e_sum = jnp.sum(e, axis=-1, keepdims=True)         # (S, 1)
    e_sq = jnp.sum(e * e, axis=-1, keepdims=True)      # (S, 1)
    x_sum = jnp.sum(x, axis=-1, keepdims=True)         # (B, S, 1)
    x_sq = jnp.sum(x * x, axis=-1, keepdims=True)      # (B, S, 1)
    mu = (x_sum + e_sum[None]) / D                     # (B, S, 1)
    var = (x_sq + e_sq[None]) / D - mu * mu            # (B, S, 1)
    rstd = jax.lax.rsqrt(var + 1e-5)

    # --- Normalized concatenated row (concat only in VMEM/vregs; D = Ci + De lanes).
    eb = jnp.broadcast_to(e[None], (B, S, De))         # (B, S, De)
    xe = jnp.concatenate([x, eb], axis=-1)             # (B, S, D)
    xh = (xe - mu) * rstd * g1 + b1                    # (B, S, D)

    # --- Fused Q/K projection: ONE (B*S, D) x (D, 2P) MXU matmul.
    qk = jnp.dot(xh.reshape(B * S, D), w_ref[...],
                 preferred_element_type=jnp.float32)   # (B*S, 2P)
    qk = qk.reshape(B, S, 2 * P)
    q = qk[:, 0, :P]                                   # (B, P)       query (row 0)
    k = qk[:, :, P:]                                   # (B, S, P)    keys

    # --- Attention scores (no softmax, matching the module); stay sublane-resident.
    scale = float(D) ** -0.5
    attn_col = scale * jnp.sum(q[:, None, :] * k, axis=-1, keepdims=True)  # (B, S, 1)

    # --- Attend + residual (row 0).
    values = xh[:, :, :Ci]                             # (B, S, Ci)
    attended = jnp.sum(attn_col * values, axis=1) + values[:, 0, :]        # (B, Ci)

    # --- LayerNorm2: stats over the full row, only the last feature is emitted.
    mu2 = jnp.mean(attended, axis=-1, keepdims=True)
    var2 = jnp.mean((attended - mu2) ** 2, axis=-1, keepdims=True)
    out_last = ((attended[:, Ci - 1:Ci] - mu2) * jax.lax.rsqrt(var2 + 1e-5)
                * g2_last + b2_last)                   # (B, 1)

    # --- Lane-dense packed store: [attn | out_last | zero pad] -> (B, OUT_W).
    attn = attn_col.reshape(B, S)                      # single relayout, off critical path
    out_w = packed_ref.shape[1]
    pad_w = out_w - (S + 1)
    pieces = [attn, out_last]
    if pad_w > 0:
        pieces.append(jnp.zeros((B, pad_w), jnp.float32))
    packed_ref[...] = jnp.concatenate(pieces, axis=-1).astype(packed_ref.dtype)


@jax.jit
def single_head_attention_cat(x, E, WqT, WkT, g1, b1, g2, b2):
    """Returns (attended_values[:, :, -1], attention_weights) like the torch module."""
    B, S, Ci = x.shape
    De = E.shape[1]
    D = Ci + De
    out_w = pl.cdiv(S + 1, 128) * 128                  # lane-dense output width

    # Fuse Q/K weights and pack all LayerNorm parameters into one slab (4 DMAs total).
    W = jnp.concatenate([WqT, WkT], axis=1)            # (D, 2P)
    pad = D - Ci
    params = jnp.concatenate(
        [g1, b1,
         jnp.pad(g2, ((0, 0), (0, pad))),
         jnp.pad(b2, ((0, 0), (0, pad)))], axis=0)     # (4, D)

    vmem_spec = pl.BlockSpec(memory_space=pltpu.MemorySpace.VMEM)
    packed = pl.pallas_call(
        _attn_kernel,
        out_shape=jax.ShapeDtypeStruct((B, out_w), jnp.float32),
        in_specs=[vmem_spec] * 4,
        out_specs=vmem_spec,
    )(x, E, W, params)

    attn = packed[:, :S].reshape(B, 1, S)
    out_last = packed[:, S:S + 1]
    return out_last, attn


def _reference(x, E, WqT, WkT, g1, b1, g2, b2):
    """Plain-JAX mirror of the PyTorch forward, for correctness checking."""
    B, S, Ci = x.shape
    De = E.shape[1]
    D = Ci + De
    xe = jnp.concatenate([x, jnp.broadcast_to(E[None], (B, S, De))], axis=-1)
    mu = xe.mean(-1, keepdims=True)
    var = ((xe - mu) ** 2).mean(-1, keepdims=True)
    xh = (xe - mu) / jnp.sqrt(var + 1e-5) * g1[0] + b1[0]
    scale = D ** (-0.5)
    q = xh[:, 0:1, :] @ WqT
    k = xh @ WkT
    attn = scale * (q @ jnp.swapaxes(k, -1, -2))
    v = xh[:, :, :Ci]
    att = attn @ v + v[:, 0:1, :]
    mu2 = att.mean(-1, keepdims=True)
    var2 = ((att - mu2) ** 2).mean(-1, keepdims=True)
    out = (att - mu2) / jnp.sqrt(var2 + 1e-5) * g2[0] + b2[0]
    return out[:, :, -1], attn


if __name__ == "__main__":
    B, S, Ci, De = 2, 8, 16, 16     # batch, seq_len, input_dim, emb_dim
    D = Ci + De
    P = S                           # proj_dim defaults to seq_len

    key = jax.random.PRNGKey(0)
    kx, ke, kq, kk = jax.random.split(key, 4)

    x = jax.random.normal(kx, (B, S, Ci), dtype=jnp.float32)
    E = jax.random.normal(ke, (S, De), dtype=jnp.float32)           # nn.Parameter randn
    bound = 1.0 / (D ** 0.5)                                        # torch Linear init scale
    WqT = jax.random.uniform(kq, (D, P), jnp.float32, -bound, bound)
    WkT = jax.random.uniform(kk, (D, P), jnp.float32, -bound, bound)
    g1 = jnp.ones((1, D), jnp.float32)
    b1 = jnp.zeros((1, D), jnp.float32)
    g2 = jnp.ones((1, Ci), jnp.float32)
    b2 = jnp.zeros((1, Ci), jnp.float32)

    out_last, attn_w = single_head_attention_cat(x, E, WqT, WkT, g1, b1, g2, b2)
    jax.block_until_ready((out_last, attn_w))

    ref_last, ref_attn = _reference(x, E, WqT, WkT, g1, b1, g2, b2)
    assert out_last.shape == (B, 1) and attn_w.shape == (B, 1, S)
    assert jnp.allclose(out_last, ref_last, atol=1e-4, rtol=1e-4)
    assert jnp.allclose(attn_w, ref_attn, atol=1e-4, rtol=1e-4)

    print("KERNEL_OK")
</pallas_src>

<mosaic_0001>
module attributes {stable_mosaic.version = 11 : i64} {
  func.func @_attn_kernel(%arg0: memref<2x8x16xf32, #tpu.memory_space<vmem>>, %arg1: memref<8x16xf32, #tpu.memory_space<vmem>>, %arg2: memref<32x16xf32, #tpu.memory_space<vmem>>, %arg3: memref<4x32xf32, #tpu.memory_space<vmem>>, %arg4: memref<2x128xf32, #tpu.memory_space<vmem>>) attributes {dimension_semantics = [], scalar_prefetch = 0 : i64, scratch_operands = 0 : i64, tpu.core_type = #tpu.core_type<tc>} {
    %c0 = arith.constant 0 : index
    %c0_0 = arith.constant 0 : index
    %c0_1 = arith.constant 0 : index
    %0 = vector.load %arg0[%c0, %c0_0, %c0_1] : memref<2x8x16xf32, #tpu.memory_space<vmem>>, vector<2x8x16xf32>
    %c0_2 = arith.constant 0 : index
    %c0_3 = arith.constant 0 : index
    %1 = vector.load %arg1[%c0_2, %c0_3] : memref<8x16xf32, #tpu.memory_space<vmem>>, vector<8x16xf32>
    %c0_4 = arith.constant 0 : index
    %c0_5 = arith.constant 0 : index
    %2 = vector.load %arg3[%c0_4, %c0_5] : memref<4x32xf32, #tpu.memory_space<vmem>>, vector<1x32xf32>
    %c1 = arith.constant 1 : index
    %c0_6 = arith.constant 0 : index
    %3 = vector.load %arg3[%c1, %c0_6] : memref<4x32xf32, #tpu.memory_space<vmem>>, vector<1x32xf32>
    %c2 = arith.constant 2 : index
    %c15 = arith.constant 15 : index
    %4 = vector.load %arg3[%c2, %c15] : memref<4x32xf32, #tpu.memory_space<vmem>>, vector<1x1xf32>
    %c3 = arith.constant 3 : index
    %c15_7 = arith.constant 15 : index
    %5 = vector.load %arg3[%c3, %c15_7] : memref<4x32xf32, #tpu.memory_space<vmem>>, vector<1x1xf32>
    %cst = arith.constant dense<0.000000e+00> : vector<8xf32>
    %6 = vector.multi_reduction <add>, %1, %cst [1] : vector<8x16xf32> to vector<8xf32>
    %7 = vector.shape_cast %6 : vector<8xf32> to vector<8x1xf32>
    %8 = arith.mulf %1, %1 : vector<8x16xf32>
    %cst_8 = arith.constant dense<0.000000e+00> : vector<8xf32>
    %9 = vector.multi_reduction <add>, %8, %cst_8 [1] : vector<8x16xf32> to vector<8xf32>
    %10 = vector.shape_cast %9 : vector<8xf32> to vector<8x1xf32>
    %cst_9 = arith.constant dense<0.000000e+00> : vector<2x8xf32>
    %11 = vector.multi_reduction <add>, %0, %cst_9 [2] : vector<2x8x16xf32> to vector<2x8xf32>
    %12 = vector.shape_cast %11 : vector<2x8xf32> to vector<2x8x1xf32>
    %13 = arith.mulf %0, %0 : vector<2x8x16xf32>
    %cst_10 = arith.constant dense<0.000000e+00> : vector<2x8xf32>
    %14 = vector.multi_reduction <add>, %13, %cst_10 [2] : vector<2x8x16xf32> to vector<2x8xf32>
    %15 = vector.shape_cast %14 : vector<2x8xf32> to vector<2x8x1xf32>
    %16 = vector.shape_cast %7 : vector<8x1xf32> to vector<1x8x1xf32>
    %17 = vector.broadcast %16 : vector<1x8x1xf32> to vector<2x8x1xf32>
    %18 = arith.addf %12, %17 : vector<2x8x1xf32>
    %cst_11 = arith.constant 3.200000e+01 : f32
    %19 = vector.broadcast %cst_11 : f32 to vector<2x8x1xf32>
    %20 = arith.divf %18, %19 : vector<2x8x1xf32>
    %21 = vector.shape_cast %10 : vector<8x1xf32> to vector<1x8x1xf32>
    %22 = vector.broadcast %21 : vector<1x8x1xf32> to vector<2x8x1xf32>
    %23 = arith.addf %15, %22 : vector<2x8x1xf32>
    %cst_12 = arith.constant 3.200000e+01 : f32
    %24 = vector.broadcast %cst_12 : f32 to vector<2x8x1xf32>
    %25 = arith.divf %23, %24 : vector<2x8x1xf32>
    %26 = arith.mulf %20, %20 : vector<2x8x1xf32>
    %27 = arith.subf %25, %26 : vector<2x8x1xf32>
    %cst_13 = arith.constant 9.99999974E-6 : f32
    %28 = vector.broadcast %cst_13 : f32 to vector<2x8x1xf32>
    %29 = arith.addf %27, %28 : vector<2x8x1xf32>
    %30 = math.rsqrt %29 : vector<2x8x1xf32>
    %31 = vector.shape_cast %1 : vector<8x16xf32> to vector<1x8x16xf32>
    %32 = vector.shape_cast %31 : vector<1x8x16xf32> to vector<1x8x16xf32>
    %33 = vector.broadcast %32 : vector<1x8x16xf32> to vector<2x8x16xf32>
    %34 = tpu.concatenate %0, %33 in 2 : vector<2x8x16xf32>, vector<2x8x16xf32> -> vector<2x8x32xf32>
    %35 = vector.broadcast %20 : vector<2x8x1xf32> to vector<2x8x32xf32>
    %36 = arith.subf %34, %35 : vector<2x8x32xf32>
    %37 = vector.broadcast %30 : vector<2x8x1xf32> to vector<2x8x32xf32>
    %38 = arith.mulf %36, %37 : vector<2x8x32xf32>
    %39 = vector.shape_cast %2 : vector<1x32xf32> to vector<1x1x32xf32>
    %40 = vector.broadcast %39 : vector<1x1x32xf32> to vector<2x8x32xf32>
    %41 = arith.mulf %38, %40 : vector<2x8x32xf32>
    %42 = vector.shape_cast %3 : vector<1x32xf32> to vector<1x1x32xf32>
    %43 = vector.broadcast %42 : vector<1x1x32xf32> to vector<2x8x32xf32>
    %44 = arith.addf %41, %43 : vector<2x8x32xf32>
    %45 = vector.shape_cast %44 : vector<2x8x32xf32> to vector<16x32xf32>
    %c0_14 = arith.constant 0 : index
    %c0_15 = arith.constant 0 : index
    %46 = vector.load %arg2[%c0_14, %c0_15] : memref<32x16xf32, #tpu.memory_space<vmem>>, vector<32x16xf32>
    %cst_16 = arith.constant dense<0.000000e+00> : vector<16x16xf32>
    %47 = tpu.matmul %45, %46, %cst_16 {dimension_numbers = #tpu.dot_dimension_numbers<[1], [0], [0], [1], [0, 0, 1, 1], [], []>} : vector<16x32xf32>, vector<32x16xf32>, vector<16x16xf32> -> vector<16x16xf32>
    %48 = vector.shape_cast %47 : vector<16x16xf32> to vector<2x8x16xf32>
    %49 = vector.extract_strided_slice %48 {offsets = [0, 0, 0], sizes = [2, 1, 8], strides = [1, 1, 1]} : vector<2x8x16xf32> to vector<2x1x8xf32>
    %50 = vector.shape_cast %49 : vector<2x1x8xf32> to vector<2x8xf32>
    %51 = vector.extract_strided_slice %48 {offsets = [0, 0, 8], sizes = [2, 8, 8], strides = [1, 1, 1]} : vector<2x8x16xf32> to vector<2x8x8xf32>
    %52 = vector.shape_cast %50 : vector<2x8xf32> to vector<2x1x8xf32>
    %53 = vector.broadcast %52 : vector<2x1x8xf32> to vector<2x8x8xf32>
    %54 = arith.mulf %53, %51 : vector<2x8x8xf32>
    %cst_17 = arith.constant dense<0.000000e+00> : vector<2x8xf32>
    %55 = vector.multi_reduction <add>, %54, %cst_17 [2] : vector<2x8x8xf32> to vector<2x8xf32>
    %56 = vector.shape_cast %55 : vector<2x8xf32> to vector<2x8x1xf32>
    %cst_18 = arith.constant 0.176776692 : f32
    %57 = vector.broadcast %cst_18 : f32 to vector<2x8x1xf32>
    %58 = arith.mulf %57, %56 : vector<2x8x1xf32>
    %59 = vector.extract_strided_slice %44 {offsets = [0, 0, 0], sizes = [2, 8, 16], strides = [1, 1, 1]} : vector<2x8x32xf32> to vector<2x8x16xf32>
    %60 = vector.broadcast %58 : vector<2x8x1xf32> to vector<2x8x16xf32>
    %61 = arith.mulf %60, %59 : vector<2x8x16xf32>
    %cst_19 = arith.constant dense<0.000000e+00> : vector<2x16xf32>
    %62 = vector.multi_reduction <add>, %61, %cst_19 [1] : vector<2x8x16xf32> to vector<2x16xf32>
    %63 = vector.extract_strided_slice %59 {offsets = [0, 0, 0], sizes = [2, 1, 16], strides = [1, 1, 1]} : vector<2x8x16xf32> to vector<2x1x16xf32>
    %64 = vector.shape_cast %63 : vector<2x1x16xf32> to vector<2x16xf32>
    %65 = arith.addf %62, %64 : vector<2x16xf32>
    %cst_20 = arith.constant dense<0.000000e+00> : vector<2xf32>
    %66 = vector.multi_reduction <add>, %65, %cst_20 [1] : vector<2x16xf32> to vector<2xf32>
    %67 = vector.shape_cast %66 : vector<2xf32> to vector<2x1xf32>
    %cst_21 = arith.constant 1.600000e+01 : f32
    %68 = vector.broadcast %cst_21 : f32 to vector<2x1xf32>
    %69 = arith.divf %67, %68 : vector<2x1xf32>
    %70 = vector.broadcast %69 : vector<2x1xf32> to vector<2x16xf32>
    %71 = arith.subf %65, %70 : vector<2x16xf32>
    %72 = arith.mulf %71, %71 : vector<2x16xf32>
    %cst_22 = arith.constant dense<0.000000e+00> : vector<2xf32>
    %73 = vector.multi_reduction <add>, %72, %cst_22 [1] : vector<2x16xf32> to vector<2xf32>
    %74 = vector.shape_cast %73 : vector<2xf32> to vector<2x1xf32>
    %cst_23 = arith.constant 1.600000e+01 : f32
    %75 = vector.broadcast %cst_23 : f32 to vector<2x1xf32>
    %76 = arith.divf %74, %75 : vector<2x1xf32>
    %77 = vector.extract_strided_slice %65 {offsets = [0, 15], sizes = [2, 1], strides = [1, 1]} : vector<2x16xf32> to vector<2x1xf32>
    %78 = arith.subf %77, %69 : vector<2x1xf32>
    %cst_24 = arith.constant 9.99999974E-6 : f32
    %79 = vector.broadcast %cst_24 : f32 to vector<2x1xf32>
    %80 = arith.addf %76, %79 : vector<2x1xf32>
    %81 = math.rsqrt %80 : vector<2x1xf32>
    %82 = arith.mulf %78, %81 : vector<2x1xf32>
    %83 = vector.broadcast %4 : vector<1x1xf32> to vector<2x1xf32>
    %84 = arith.mulf %82, %83 : vector<2x1xf32>
    %85 = vector.broadcast %5 : vector<1x1xf32> to vector<2x1xf32>
    %86 = arith.addf %84, %85 : vector<2x1xf32>
    %87 = vector.shape_cast %58 : vector<2x8x1xf32> to vector<2x8xf32>
    %cst_25 = arith.constant 0.000000e+00 : f32
    %88 = vector.broadcast %cst_25 : f32 to vector<2x119xf32>
    %89 = tpu.concatenate %87, %86, %88 in 1 : vector<2x8xf32>, vector<2x1xf32>, vector<2x119xf32> -> vector<2x128xf32>
    %c0_26 = arith.constant 0 : index
    %c0_27 = arith.constant 0 : index
    %90 = vector.load %arg4[%c0_26, %c0_27] : memref<2x128xf32, #tpu.memory_space<vmem>>, vector<2x128xf32>
    tpu.vector_store %arg4[%c0_26, %c0_27], %89 {strides = array<i32>} : memref<2x128xf32, #tpu.memory_space<vmem>>, vector<2x128xf32>,
    return
  }
}

</mosaic_0001>

<bundles_post_ra>
// kernel: single_head_attention_cat.1
= control target key start
LH: loop header
LB: loop body
LE: loop exit
PB: predicated region body
PF: predicated region fallthrough
CT: control target
= control target key end

     0   :  { %vm24_vm0 = vcmask 130048   ;;  %vm89_vm1 = vcmask 261120   ;;  %s335_s5 = smov 120   ;;  %v171_v55 = vlaneseq  ;;  %vm189_vm2 = vcmask 64512   ;;  %s336_s10 = smov 121   ;;  %s415_s1 = inlined_call_operand.vmem [shape: f32[8,16], index: 1, kind: input, shape index: {}]   ;;  %s416_s0 = inlined_call_operand.vmem [shape: f32[2,8,16], index: 0, kind: input, shape index: {}]   ;;  %s417_s2 = inlined_call_operand.vmem [shape: f32[32,16], index: 2, kind: input, shape index: {}]   ;;  %s418_s3 = inlined_call_operand.vmem [shape: f32[4,32], index: 3, kind: input, shape index: {}]   ;;  %s419_s4 = inlined_call_operand.vmem [shape: f32[2,128], index: 4, kind: output, shape index: {}]  }
   0x1   :  { %v19_v0 = vld [vmem:[%s415_s1] sm:$0xff]  ;;  %v18_v1 = vld [vmem:[%s416_s0 + $0x8] sm:$0xff]  ;;  %v87_v15 = vld [vmem:[%s417_s2 + $0x10] sm:$0xff]  ;;  %vm219_vm3 = vcmask 1041409   ;;  %vm222_vm4 = vcmask 123904   ;;  %vm287_vm5 = vcmask 72704  }
   0x2   :  { %v17_v2 = vld [vmem:[%s416_s0] sm:$0xff]  ;;  %v25_v3 = vsel %vm24_vm0, %v19_v0, 0.0  ;;  %v35_v4 = vsel %vm24_vm0, %v18_v1, 0.0  ;;  %v28_v5 = vmul.f32 %v19_v0, %v19_v0  ;;  %v39_v8 = vmul.f32 %v18_v1, %v18_v1  ;;  %s334_s0 = smov 16   ;;  %v86_v13 = vld [vmem:[%s417_s2 + $0x8] sm:$0xff]  ;;  %v88_v16 = vld [vmem:[%s417_s2 + $0x18] sm:$0xff] }
   0x3   :  { %26 = vadd.xlane.f32.xlu0 %v25_v3  ;;  %36 = vadd.xlane.f32.xlu1 %v35_v4  ;;  %v32_v7 = vsel %vm24_vm0, %v17_v2, 0.0  ;;  %v38_v9 = vmul.f32 %v17_v2, %v17_v2  ;;  %v85_v12 = vld [vmem:[%s417_s2] sm:$0xff]  ;;  %v321_v17 = vpack.c.bf16 %v88_v16, %v87_v15  ;;  %v172_v56 = vshrl.u32 %v171_v55, 7 }
   0x4   :  { %v29_v6 = vsel %vm24_vm0, %v28_v5, 0.0  ;;  %v43_v10 = vsel %vm24_vm0, %v39_v8, 0.0  ;;  %v317_v14 = vpack.c.bf16 %v86_v13, %v85_v12  ;;  %v294_v43 = vld [vmem:[%s418_s3] ss:$0 sm:$0xff]  ;;  %v295_v48 = vld [vmem:[%s418_s3 + $0x1] ss:$0 sm:$0xff] }
   0x5   :  { %v40_v11 = vsel %vm24_vm0, %v38_v9, 0.0  ;;  %v173_v57 = vsub.s32 0, %v172_v56 }
   0x6   :  { %318 = vmatprep.subr.bf16.mxu0 %v317_v14 }
   0x7   :  { %30 = vadd.xlane.f32.xlu1 %v29_v6  ;;  %33 = vadd.xlane.f32.xlu0 %v32_v7 }
   0x8   :  { %320 = vmatpush3.bf16.msra.mxu0 %v317_v14 }
   0x9   :  { %322 = vmatprep.subr.bf16.mxu0 %v321_v17 }
   0xb   :  { %44 = vadd.xlane.f32.xlu1 %v43_v10  ;;  %41 = vadd.xlane.f32.xlu0 %v40_v11 }
   0xc   :  { %324 = vmatpush3.bf16.msra.mxu0 %v321_v17 }
  0x21   :  { %64 = vrot.lane.b32.xlu0 %v19_v0, %s334_s0 }
  0x90   :  { %v27_v18 = vpop.xlane.xlu0 %26  ;;  %v37_v19 = vpop.xlane.xlu1 %36 }
  0x91   :  { %v47_v20 = vadd.f32 %v37_v19, %v27_v18 }
  0x93   :  { %v50_v24 = vmul.f32 0.03125, %v47_v20 }
  0x94   :  { %v31_v21 = vpop.xlane.xlu1 %30  ;;  %v34_v22 = vpop.xlane.xlu0 %33 }
  0x95   :  { %v46_v23 = vadd.f32 %v34_v22, %v27_v18  ;;  %v56_v30 = vmul.f32 %v50_v24, %v50_v24 }
  0x97   :  { %v49_v25 = vmul.f32 0.03125, %v46_v23 }
  0x98   :  { %v45_v26 = vpop.xlane.xlu1 %44  ;;  %v42_v27 = vpop.xlane.xlu0 %41 }
  0x99   :  { %v52_v28 = vadd.f32 %v45_v26, %v31_v21  ;;  %v51_v29 = vadd.f32 %v42_v27, %v31_v21  ;;  %v55_v31 = vmul.f32 %v49_v25, %v49_v25 }
  0x9b   :  { %v54_v32 = vmul.f32 0.03125, %v52_v28  ;;  %v53_v33 = vmul.f32 0.03125, %v51_v29 }
  0x9c   :  { %v65_v38 = vpop.permute.xlu0 %64 }
  0x9d   :  { %v58_v34 = vsub.f32 %v54_v32, %v56_v30  ;;  %v57_v35 = vsub.f32 %v53_v33, %v55_v31  ;;  %v68_v39 = vsel %vm24_vm0, %v18_v1, %v65_v38  ;;  %v67_v40 = vsel %vm24_vm0, %v17_v2, %v65_v38 }
  0x9e   :  { %v70_v41 = vsub.f32 %v68_v39, %v50_v24  ;;  %v69_v44 = vsub.f32 %v67_v40, %v49_v25  ;;  %v268_v2 = vand.u32 127, %v171_v55 }
  0x9f   :  { %v60_v36 = vadd.f32 1e-05, %v58_v34  ;;  %v59_v37 = vadd.f32 1e-05, %v57_v35 }
  0xa0   :  { %v271_v5 = vsub.s32 %v268_v2, %v172_v56 }
  0xa1   :  { %328 = vrsqrt.f32 %v60_v36 }
  0xa2   :  { %330 = vrsqrt.f32 %v59_v37 }
  0xab   :  { %v329_v42 = vpop.eup %328 }
  0xac   :  { %v331_v45 = vpop.eup %330  ;;  %v72_v46 = vmul.f32 %v329_v42, %v70_v41 }
  0xad   :  { %v71_v47 = vmul.f32 %v331_v45, %v69_v44 }
  0xae   :  { %v78_v49 = vmul.f32 %v294_v43, %v72_v46 }
  0xaf   :  { %v77_v50 = vmul.f32 %v294_v43, %v71_v47 }
  0xb0   :  { %v84_v51 = vadd.f32 %v295_v48, %v78_v49 }
  0xb1   :  { %v83_v52 = vadd.f32 %v295_v48, %v77_v50  ;;  %v298_v48 = vld [vmem:[%s418_s3 + $0x2] ss:$0 sm:$0xff] }
  0xb3   :  { %314 = vmatprep.mubr.msk.f32.mxu0 %vm89_vm1, %v83_v52 }
  0xb4   :  { %315 = vmatmul.mubr.msk.f32.vlgmr.msra.gmra.mrb[0].mxu0 %vm89_vm1, %v84_v51 }
 0x187   :  { %v316_v53 = vpop.f32.mrb[0].mxu0 }
 0x188   :  { %183 = vrot.lane.b32.xlu1 %v316_v53, %s335_s5  ;;  %v162_v54 = vpop.f32.mrb[1].mxu0  ;;  %v178_v58 = vrot.slane %v316_v53, %v173_v57 }
 0x189   :  { %v174_v61 = vrot.slane %v162_v54, %v173_v57 }
 0x18c   :  { %181 = vrot.lane.b32.xlu1 %v162_v54, %s335_s5 }
 0x1fa   :  { %v184_v59 = vpop.permute.xlu1 %183 }
 0x1fb   :  { %v188_v60 = vmul.f32 %v184_v59, %v178_v58 }
 0x1fd   :  { %v193_v62 = vsel %vm189_vm2, %v188_v60, 0.0 }
 0x1fe   :  { %194 = vadd.xlane.f32.xlu1 %v193_v62  ;;  %v182_v63 = vpop.permute.xlu1 %181 }
 0x1ff   :  { %v187_v0 = vmul.f32 %v182_v63, %v174_v61 }
 0x201   :  { %v190_v1 = vsel %vm189_vm2, %v187_v0, 0.0 }
 0x202   :  { %191 = vadd.xlane.f32.xlu0 %v190_v1 }
 0x28b   :  { %v195_v3 = vpop.xlane.xlu1 %194 }
 0x28c   :  { %v197_v4 = vmul.f32 0.17677669, %v195_v3 }
 0x28e   :  { %v199_v6 = vmul.f32 %v197_v4, %v84_v51  ;;  %v276_v11 = vrot.slane %v197_v4, %v271_v5 }
 0x28f   :  { %v192_v7 = vpop.xlane.xlu0 %191 }
 0x290   :  { %v207_v8 = vsel %vm24_vm0, %v199_v6, 0.0  ;;  %v196_v9 = vmul.f32 0.17677669, %v192_v7 }
 0x291   :  { %v208_v10 = vrot.slane %v207_v8, 4 }
 0x292   :  { %v198_v12 = vmul.f32 %v196_v9, %v83_v52  ;;  %v272_v13 = vrot.slane %v196_v9, %v271_v5 }
 0x293   :  { %v209_v14 = vadd.f32 %v208_v10, %v207_v8 }
 0x294   :  { %v200_v15 = vsel %vm24_vm0, %v198_v12, 0.0  ;;  %v277_v16 = vsel %vm219_vm3, %v276_v11, %v272_v13 }
 0x295   :  { %v210_v17 = vrot.slane %v209_v14, 2  ;;  %v201_v18 = vrot.slane %v200_v15, 4 }
 0x297   :  { %v211_v19 = vadd.f32 %v210_v17, %v209_v14  ;;  %v202_v20 = vadd.f32 %v201_v18, %v200_v15 }
 0x299   :  { %v212_v21 = vrot.slane %v211_v19, 1  ;;  %v203_v22 = vrot.slane %v202_v20, 2 }
 0x29b   :  { %v213_v23 = vadd.f32 %v212_v21, %v211_v19  ;;  %v204_v24 = vadd.f32 %v203_v22, %v202_v20 }
 0x29d   :  { %v205_v25 = vrot.slane %v204_v24, 1  ;;  %v215_v26 = vadd.f32 %v213_v23, %v84_v51 }
 0x29f   :  { %v206_v27 = vadd.f32 %v205_v25, %v204_v24  ;;  %v218_v29 = vrot.slane %v215_v26, 7 }
 0x2a1   :  { %v214_v28 = vadd.f32 %v206_v27, %v83_v52  ;;  %v299_v52 = vld [vmem:[%s418_s3 + $0x3] ss:$0 sm:$0xff] }
 0x2a3   :  { %v220_v30 = vsel %vm219_vm3, %v218_v29, %v214_v28 }
 0x2a4   :  { %v223_v31 = vsel %vm222_vm4, %v220_v30, 0.0 }
 0x2a5   :  { %224 = vadd.xlane.f32.xlu0 %v223_v31 }
 0x332   :  { %v225_v32 = vpop.xlane.xlu0 %224 }
 0x333   :  { %v227_v33 = vmul.f32 0.0625, %v225_v32 }
 0x335   :  { %v229_v34 = vrot.slane %v227_v33, 1  ;;  %v232_v35 = vsub.f32 %v214_v28, %v227_v33 }
 0x337   :  { %v233_v36 = vsub.f32 %v215_v26, %v229_v34  ;;  %v234_v38 = vmul.f32 %v232_v35, %v232_v35 }
 0x339   :  { %v235_v37 = vmul.f32 %v233_v36, %v233_v36 }
 0x33b   :  { %v238_v39 = vrot.slane %v235_v37, 7 }
 0x33d   :  { %v239_v40 = vsel %vm219_vm3, %v238_v39, %v234_v38 }
 0x33e   :  { %v241_v41 = vsel %vm222_vm4, %v239_v40, 0.0 }
 0x33f   :  { %242 = vadd.xlane.f32.xlu0 %v241_v41 }
 0x3cc   :  { %v243_v42 = vpop.xlane.xlu0 %242 }
 0x3cd   :  { %v244_v43 = vmul.f32 0.0625, %v243_v42 }
 0x3cf   :  { %v245_v44 = vadd.f32 1e-05, %v244_v43 }
 0x3d1   :  { %332 = vrsqrt.f32 %v245_v44 }
 0x3db   :  { %v333_v45 = vpop.eup %332 }
 0x3dc   :  { %v248_v46 = vrot.slane %v333_v45, 1  ;;  %v251_v47 = vmul.f32 %v333_v45, %v232_v35 }
 0x3de   :  { %v252_v49 = vmul.f32 %v248_v46, %v233_v36  ;;  %v257_v50 = vmul.f32 %v298_v48, %v251_v47 }
 0x3e0   :  { %v258_v51 = vmul.f32 %v298_v48, %v252_v49  ;;  %v263_v54 = vadd.f32 %v299_v52, %v257_v50 }
 0x3e2   :  { %v264_v53 = vadd.f32 %v299_v52, %v258_v51 }
 0x3e4   :  { %v281_v55 = vrot.slane %v264_v53, 7 }
 0x3e6   :  { %v282_v56 = vsel %vm219_vm3, %v281_v55, %v263_v54 }
 0x3e7   :  { %283 = vrot.lane.b32.xlu1 %v282_v56, %s336_s10 }
 0x459   :  { %v284_v57 = vpop.permute.xlu1 %283 }
 0x45a   :  { %v286_v58 = vsel %vm189_vm2, %v277_v16, %v284_v57 }
 0x45b   :  { %v288_v59 = vsel %vm287_vm5, %v286_v58, 0.0 }
 0x45c   :  { %289 = vst [vmem:[%s419_s4] sm:$0x3] %v288_v59 }

</bundles_post_ra>
